<compile_context>
chip_gen: v7x
topology: tpu7x:2x2x1
jax: 0.10.0
libtpu: 0.0.40
codegen_flags: <defaults>
</compile_context>

<pallas_src>
import math

import jax
import jax.numpy as jnp
from jax import lax
from jax.experimental import pallas as pl
from jax.experimental.pallas import tpu as pltpu

_LANE = 128  # slab lane width (full vreg lanes)


def _tpu_generation_params():
    """(block_bytes_per_input_per_step, vmem_limit_bytes_or_None, n_tensorcores)."""
    kind = ""
    try:
        kind = (getattr(jax.devices()[0], "device_kind", "") or "").lower()
    except Exception:
        pass
    if ("v7" in kind) or ("7x" in kind):
        # 2 TCs/chip, ~3.2 TB/s HBM, 64 MiB VMEM (32 MiB scoped default):
        # 2 inputs x 2 buffers x 8 MiB = 32 MiB, so raise the scoped limit.
        return 8 << 20, 48 << 20, 2
    if ("v6" in kind) or ("trillium" in kind):
        # Single TC, 32 MiB scoped-VMEM default: 2 x 2 x 4 MiB = 16 MiB fits.
        return 4 << 20, None, 1
    # v5e / unknown: stay safely under the 16 MiB scoped-VMEM default.
    return 2 << 20, None, 1


def _make_l1_partial_kernel(block_rows, group_rows, steps_per_chunk,
                            valid_rows, first_masked_block, any_mask):
    """Kernel producing per-lane partial |pred-gt| sums (one (8,128) output
    row-block per chunk, resident across the step axis)."""
    num_groups = block_rows // group_rows

    def _accumulate(pred_ref, gt_ref, out_ref, blk, masked):
        def body(g, acc):
            r0 = pl.multiple_of(g * group_rows, group_rows)
            # Upcast BEFORE subtracting: no int wraparound, f32 accumulation.
            p = pred_ref[pl.ds(r0, group_rows), :].astype(jnp.float32)
            q = gt_ref[pl.ds(r0, group_rows), :].astype(jnp.float32)
            d = jnp.abs(p - q)
            if masked:
                rid = (blk * block_rows + r0
                       + lax.broadcasted_iota(jnp.int32, d.shape, 0))
                d = jnp.where(rid < valid_rows, d, 0.0)
            # Fold the group's rows into 8 sublanes with pure VPU adds.
            return acc + jnp.sum(d.reshape(group_rows // 8, 8, _LANE), axis=0)

        acc = lax.fori_loop(0, num_groups, body,
                            jnp.zeros((8, _LANE), jnp.float32))
        out_ref[...] += acc

    def kernel(pred_ref, gt_ref, out_ref):
        c = pl.program_id(0)
        s = pl.program_id(1)

        # Zero the resident per-chunk accumulator on the chunk's first step.
        @pl.when(s == 0)
        def _():
            out_ref[...] = jnp.zeros_like(out_ref)

        if any_mask:
            blk = c * steps_per_chunk + s  # logical (unclamped) block index

            # Steady-state blocks: mask-free path.
            @pl.when(blk < first_masked_block)
            def _():
                _accumulate(pred_ref, gt_ref, out_ref, blk, False)

            # Tail / phantom blocks only: pay iota+compare+select here.
            @pl.when(blk >= first_masked_block)
            def _():
                _accumulate(pred_ref, gt_ref, out_ref, blk, True)
        else:
            _accumulate(pred_ref, gt_ref, out_ref, 0, False)

    return kernel


def depth_loss_for_deformation(pred_flows, gt_flows):
    """L1 loss (mean of |pred - gt|), same semantics as nn.L1Loss() default."""
    assert pred_flows.shape == gt_flows.shape, "shape mismatch"
    assert pred_flows.dtype == gt_flows.dtype, "dtype mismatch"

    n = math.prod(pred_flows.shape)
    assert n > 0, "empty input"
    itemsize = jnp.dtype(pred_flows.dtype).itemsize
    sub = max(8, 32 // itemsize)       # row tile: f32 -> 8, bf16 -> 16, i8 -> 32
    group_rows_pref = 16 * sub         # rows per in-kernel fori_loop group

    block_bytes, vmem_limit, n_tc = _tpu_generation_params()

    pred_flat = pred_flows.reshape(-1)
    gt_flat = gt_flows.reshape(-1)

    # Tiny inputs (< one group) pad up to a full (sub,128) tile (negligible);
    # everything else needs at most 128-element alignment for the free
    # (rows, 128) reshape — the common case (incl. the test shape) pads NOTHING.
    # Zero padding contributes |0 - 0| = 0 to the sum.
    # TODO(synk): sizes not a multiple of 128 still pay a jnp.pad HBM copy; an
    # element-granular mask over a 1-D slab would remove that copy.
    tiny = n < group_rows_pref * _LANE
    pad_unit = sub * _LANE if tiny else _LANE
    rem = n % pad_unit
    if rem:
        pad = pad_unit - rem
        pred_flat = jnp.pad(pred_flat, (0, pad))
        gt_flat = jnp.pad(gt_flat, (0, pad))

    rows = pred_flat.shape[0] // _LANE
    pred_2d = pred_flat.reshape(rows, _LANE)
    gt_2d = gt_flat.reshape(rows, _LANE)

    if tiny:
        # Single block covering everything (rows is a multiple of sub >= 8).
        block_rows = rows
        group_rows = rows
    else:
        # Byte-sized blocks (generation dependent), multiple of group_rows,
        # never larger than the slab.
        group_rows = group_rows_pref
        target_rows = max(group_rows,
                          (block_bytes // (_LANE * itemsize))
                          // group_rows * group_rows)
        block_rows = min(target_rows, (rows // group_rows) * group_rows)

    num_blocks = pl.cdiv(rows, block_rows)

    # Leading 'parallel' chunk axis only on multi-TensorCore chips (v7x);
    # single-TC v5e/v6e keep a 1-chunk, phantom-free, mask-free hot loop.
    num_chunks = 2 if (n_tc >= 2 and num_blocks >= 2) else 1
    steps = pl.cdiv(num_blocks, num_chunks)

    first_masked_block = rows // block_rows
    any_mask = (rows % block_rows != 0) or (num_chunks * steps != num_blocks)

    def in_index_map(c, s):
        # Clamp phantom trailing blocks (odd num_blocks on the 2-chunk split)
        # onto the last real block; their contribution is masked to zero.
        return (jnp.minimum(c * steps + s, num_blocks - 1), 0)

    in_spec = pl.BlockSpec((block_rows, _LANE), in_index_map)
    out_spec = pl.BlockSpec((8, _LANE), lambda c, s: (c, 0))

    kernel = _make_l1_partial_kernel(block_rows, group_rows, steps, rows,
                                     first_masked_block, any_mask)

    cp_kwargs = dict(dimension_semantics=("parallel", "arbitrary"))
    if vmem_limit is not None:
        cp_kwargs["vmem_limit_bytes"] = int(vmem_limit)

    partials = pl.pallas_call(
        kernel,
        out_shape=jax.ShapeDtypeStruct((num_chunks * 8, _LANE), jnp.float32),
        grid=(num_chunks, steps),
        in_specs=[in_spec, in_spec],
        out_specs=out_spec,
        compiler_params=pltpu.CompilerParams(**cp_kwargs),
        cost_estimate=pl.CostEstimate(
            flops=3 * n,
            transcendentals=0,
            bytes_accessed=2 * rows * _LANE * itemsize
            + num_chunks * 8 * _LANE * 4,
        ),
    )(pred_2d, gt_2d)

    # Tiny epilogue: cross-lane / cross-chunk reduce, then mean over the
    # ORIGINAL (unpadded) element count -> nn.L1Loss() 'mean' reduction.
    loss = jnp.sum(partials) / jnp.float32(n)
    if jnp.issubdtype(pred_flows.dtype, jnp.floating):
        loss = loss.astype(pred_flows.dtype)
    return loss


if __name__ == "__main__":
    key = jax.random.PRNGKey(0)
    k1, k2 = jax.random.split(key)

    # Small shapes consistent with the module: pred/gt flow maps, NCHW.
    pred_flows = jax.random.normal(k1, (2, 4, 16, 16), dtype=jnp.float32)
    gt_flows = jax.random.normal(k2, (2, 4, 16, 16), dtype=jnp.float32)

    loss = depth_loss_for_deformation(pred_flows, gt_flows)
    loss = jax.block_until_ready(loss)

    # Reference check against plain JAX (same semantics as nn.L1Loss()).
    ref = jnp.mean(jnp.abs(pred_flows - gt_flows))
    assert jnp.allclose(loss, ref, rtol=1e-6, atol=1e-6), (loss, ref)

    print("KERNEL_OK")
</pallas_src>

<mosaic_0001>
module attributes {stable_mosaic.version = 11 : i64} {
  func.func @kernel(%arg0: i32, %arg1: i32, %arg2: memref<16x128xf32, #tpu.memory_space<vmem>>, %arg3: memref<16x128xf32, #tpu.memory_space<vmem>>, %arg4: memref<8x128xf32, #tpu.memory_space<vmem>>) attributes {dimension_semantics = [#tpu.dimension_semantics<parallel>, #tpu.dimension_semantics<arbitrary>], iteration_bounds = array<i64: 1, 1>, scalar_prefetch = 0 : i64, scratch_operands = 0 : i64, tpu.core_type = #tpu.core_type<tc>, window_params = [{transform_indices = @transform_0, window_bounds = array<i64: 16, 128>}, {transform_indices = @transform_1, window_bounds = array<i64: 16, 128>}, {transform_indices = @transform_2, window_bounds = array<i64: 8, 128>}]} {
    %c0_i32 = arith.constant 0 : i32
    %0 = arith.cmpi eq, %arg1, %c0_i32 : i32
    %1 = arith.extui %0 : i1 to i32
    %c0_i32_0 = arith.constant 0 : i32
    %2 = arith.cmpi ne, %1, %c0_i32_0 : i32
    scf.if %2 {
      %cst_8 = arith.constant 0.000000e+00 : f32
      %18 = vector.broadcast %cst_8 : f32 to vector<8x128xf32>
      %c0_9 = arith.constant 0 : index
      %c0_10 = arith.constant 0 : index
      %19 = vector.load %arg4[%c0_9, %c0_10] : memref<8x128xf32, #tpu.memory_space<vmem>>, vector<8x128xf32>
      tpu.vector_store %arg4[%c0_9, %c0_10], %18 {strides = array<i32>} : memref<8x128xf32, #tpu.memory_space<vmem>>, vector<8x128xf32>,
    } else {
    }
    %cst = arith.constant 0.000000e+00 : f32
    %3 = vector.broadcast %cst : f32 to vector<8x128xf32>
    %c0_i32_1 = arith.constant 0 : i32
    %c16_i32 = arith.constant 16 : i32
    %4 = arith.muli %c0_i32_1, %c16_i32 : i32
    %5 = tpu.assume_multiple %4, 16 : i32
    %6 = arith.index_cast %5 : i32 to index
    %c0 = arith.constant 0 : index
    %7 = vector.load %arg2[%6, %c0] : memref<16x128xf32, #tpu.memory_space<vmem>>, vector<16x128xf32>
    %8 = arith.index_cast %5 : i32 to index
    %c0_2 = arith.constant 0 : index
    %9 = vector.load %arg3[%8, %c0_2] : memref<16x128xf32, #tpu.memory_space<vmem>>, vector<16x128xf32>
    %10 = arith.subf %7, %9 : vector<16x128xf32>
    %11 = math.absf %10 : vector<16x128xf32>
    %12 = vector.shape_cast %11 : vector<16x128xf32> to vector<2x8x128xf32>
    %cst_3 = arith.constant dense<0.000000e+00> : vector<8x128xf32>
    %13 = vector.multi_reduction <add>, %12, %cst_3 [0] : vector<2x8x128xf32> to vector<8x128xf32>
    %14 = arith.addf %3, %13 : vector<8x128xf32>
    %c1_i32 = arith.constant 1 : i32
    %c0_4 = arith.constant 0 : index
    %c0_5 = arith.constant 0 : index
    %15 = vector.load %arg4[%c0_4, %c0_5] : memref<8x128xf32, #tpu.memory_space<vmem>>, vector<8x128xf32>
    %16 = arith.addf %15, %14 : vector<8x128xf32>
    %c0_6 = arith.constant 0 : index
    %c0_7 = arith.constant 0 : index
    %17 = vector.load %arg4[%c0_6, %c0_7] : memref<8x128xf32, #tpu.memory_space<vmem>>, vector<8x128xf32>
    tpu.vector_store %arg4[%c0_6, %c0_7], %16 {strides = array<i32>} : memref<8x128xf32, #tpu.memory_space<vmem>>, vector<8x128xf32>,
    return
  }
  func.func @transform_0(%arg0: i32, %arg1: i32) -> (i32, i32) {
    %c1_i32 = arith.constant 1 : i32
    %0 = arith.muli %arg0, %c1_i32 : i32
    %1 = arith.addi %0, %arg1 : i32
    %c0_i32 = arith.constant 0 : i32
    %2 = arith.minsi %1, %c0_i32 : i32
    %c0_i32_0 = arith.constant 0 : i32
    %c0_i32_1 = arith.constant 0 : i32
    return %2, %c0_i32_0 : i32, i32
  }
  func.func @transform_1(%arg0: i32, %arg1: i32) -> (i32, i32) {
    %c1_i32 = arith.constant 1 : i32
    %0 = arith.muli %arg0, %c1_i32 : i32
    %1 = arith.addi %0, %arg1 : i32
    %c0_i32 = arith.constant 0 : i32
    %2 = arith.minsi %1, %c0_i32 : i32
    %c0_i32_0 = arith.constant 0 : i32
    %c0_i32_1 = arith.constant 0 : i32
    return %2, %c0_i32_0 : i32, i32
  }
  func.func @transform_2(%arg0: i32, %arg1: i32) -> (i32, i32) {
    %c0_i32 = arith.constant 0 : i32
    %c0_i32_0 = arith.constant 0 : i32
    return %arg0, %c0_i32 : i32, i32
  }
}

</mosaic_0001>

<bundles_post_ra>
// kernel: tpu_custom_call.1
= control target key start
LH: loop header
LB: loop body
LE: loop exit
PB: predicated region body
PF: predicated region fallthrough
CT: control target
= control target key end

     0   :  { %7 = vsyncpa [#allocation3], 0  ;;  %s232_s0 = inlined_call_operand.hbm [shape: f32[16,128], index: 0, kind: input, shape index: {}]   ;;  %s233_s1 = inlined_call_operand.hbm [shape: f32[16,128], index: 1, kind: input, shape index: {}]   ;;  %s234_s2 = inlined_call_operand.hbm [shape: f32[8,128], index: 2, kind: output, shape index: {}]  }
   0x1   :  { %8 = vsyncpa [#allocation6], 0 }
   0x2   :  { %9 = vsyncpa [#allocation4], 0  ;;  %s176_s9 = smov [#allocation2]   ;;  %s104_s13 = scalar_lea.hbm %s232_s0, 256 }
   0x3   :  { %s21_s10 = sshll.u32 %s176_s9, 4  ;;  %p105_p0 = scmp.ne.s32.totalorder %s232_s0, %s104_s13  ;;  %s22_s10 = int_to_ptr.vmem [resolvable:$true] %s21_s10 }
   0x4   :  { %p108_p1 = scmp.lt.u32.totalorder %s104_s13, %s232_s0 }
   0x6   :  { %p110_p2 = pnand %p108_p1, %p105_p0 }
   0x8   :  { %113 = shalt.err (!%p110_p2)
}
   0x9   :  { %s114_s18 = scalar_lea.vmem %s22_s10, 256  ;;  %p119_p4 = scmp.lt.s32.totalorder %s22_s10, %s22_s10 }
   0xa   :  { %p115_p3 = scmp.ne.s32.totalorder %s22_s10, %s114_s18  ;;  %p120_p5 = scmp.lt.s32.totalorder %s114_s18, %s114_s18 }
   0xc   :  { %p121_p6 = por %p120_p5, %p119_p4 }
   0xe   :  { %p122_p7 = pnand %p121_p6, %p115_p3 }
  0x10   :  { %125 = shalt.err (!%p122_p7)
}
  0x11   :  { %s177_s19 = smov 128   ;;  %s178_s20 = smov 8  }
  0x12   :  { %27 = dma.hbm_to_vmem [thread:$0]  %s232_s0, 256, %s22_s10, [#allocation3], %s177_s19, %s177_s19, %s178_s20  }
  0x13   :  { %s179_s23 = smov [#allocation5]   ;;  %s126_s27 = scalar_lea.hbm %s233_s1, 256 }
  0x14   :  { %s39_s24 = sshll.u32 %s179_s23, 4  ;;  %p127_p8 = scmp.ne.s32.totalorder %s233_s1, %s126_s27  ;;  %s40_s24 = int_to_ptr.vmem [resolvable:$true] %s39_s24 }
  0x15   :  { %p130_p9 = scmp.lt.u32.totalorder %s126_s27, %s233_s1 }
  0x17   :  { %p132_p10 = pnand %p130_p9, %p127_p8 }
  0x19   :  { %135 = shalt.err (!%p132_p10)
}
  0x1a   :  { %s136_s4 = scalar_lea.vmem %s40_s24, 256  ;;  %p141_p12 = scmp.lt.s32.totalorder %s40_s24, %s40_s24 }
  0x1b   :  { %p137_p11 = scmp.ne.s32.totalorder %s40_s24, %s136_s4  ;;  %p142_p13 = scmp.lt.s32.totalorder %s136_s4, %s136_s4 }
  0x1d   :  { %p143_p0 = por %p142_p13, %p141_p12 }
  0x1f   :  { %p144_p1 = pnand %p143_p0, %p137_p11 }
  0x21   :  { %147 = shalt.err (!%p144_p1)
}
  0x22   :  { %45 = dma.hbm_to_vmem [thread:$0]  %s233_s1, 256, %s40_s24, [#allocation6], %s177_s19, %s177_s19, %s178_s20  }
  0x23   :  { %170 = dma.done.wait [#allocation3], 256  }
  0x24   :  { %171 = vsyncadd [#allocation3], 4294967040 }
  0x25   :  { %172 = dma.done.wait [#allocation6], 256  }
  0x26   :  { %173 = vsyncadd [#allocation6], 4294967040  ;;  %v65_v0 = vld [vmem:[#allocation2] sm:$0xff]  ;;  %v66_v1 = vld [vmem:[#allocation2 + $0x8] sm:$0xff]  ;;  %s180_s6 = smov [#allocation7]  }
  0x27   :  { %v67_v2 = vld [vmem:[#allocation5] sm:$0xff]  ;;  %v68_v3 = vld [vmem:[#allocation5 + $0x8] sm:$0xff]  ;;  %s84_s7 = sshll.u32 %s180_s6, 4  ;;  %s85_s7 = int_to_ptr.vmem [resolvable:$true] %s84_s7 }
  0x28   :  { %v69_v4 = vsub.f32 %v65_v0, %v67_v2  ;;  %v70_v5 = vsub.f32 %v66_v1, %v68_v3  ;;  %s148_s8 = scalar_lea.vmem %s85_s7, 128  ;;  %p153_p3 = scmp.lt.s32.totalorder %s85_s7, %s85_s7 }
  0x29   :  { %p149_p2 = scmp.ne.s32.totalorder %s85_s7, %s148_s8  ;;  %p154_p4 = scmp.lt.s32.totalorder %s148_s8, %s148_s8 }
  0x2a   :  { %v71_v6 = vand.u32 2147483647, %v69_v4  ;;  %v72_v7 = vand.u32 2147483647, %v70_v5 }
  0x2b   :  { %p155_p5 = por %p154_p4, %p153_p3 }
  0x2c   :  { %v73_v8 = vadd.f32 %v72_v7, %v71_v6 }
  0x2d   :  { %p156_p6 = pnand %p155_p5, %p149_p2 }
  0x2e   :  { %77 = vst [vmem:[#allocation7] sm:$0xff] %v73_v8 }
  0x2f   :  { %159 = shalt.err (!%p156_p6)
}
  0x30   :  { %s160_s10 = scalar_lea.hbm %s234_s2, 128 }
  0x31   :  { %p161_p7 = scmp.ne.s32.totalorder %s234_s2, %s160_s10  ;;  %p164_p8 = scmp.lt.u32.totalorder %s160_s10, %s234_s2 }
  0x33   :  { %p166_p9 = pnand %p164_p8, %p161_p7 }
  0x35   :  { %169 = shalt.err (!%p166_p9)
}
  0x36   :  { %87 = dma.vmem_to_hbm [thread:$0]  %s85_s7, 128, %s234_s2, [#allocation4]  }
  0x37   :  { %174 = dma.done.wait [#allocation4], 128  }
  0x38   :  { %175 = vsyncadd [#allocation4], 4294967168 }
  0x39   :  { %91 = vsyncpa [#allocation3], 1 }
  0x3a   :  { %92 = vsyncpa [#allocation6], 1 }
  0x3b   :  { %93 = vsyncpa [#allocation4], 1 }

</bundles_post_ra>
